<compile_context>
chip_gen: v5e
topology: v5e:2x2
jax: 0.10.0
libtpu: 0.0.40
codegen_flags: <defaults>
</compile_context>

<pallas_src>
import functools

import jax
import jax.numpy as jnp
from jax.experimental import pallas as pl
from jax.experimental.pallas import tpu as pltpu


def _round_up(a: int, m: int) -> int:
    return -(-a // m) * m


def _gfp_kernel(x_ref, w_ref, phase_ref, out_ref):
    """One grid step.

    x_ref:     (rows, p)      f32 -- p batch elements packed per output row.
    w_ref:     (p, lane_w)    f32 -- row j holds [W*2pi, W*2pi] in lanes
                                     [j*2d, (j+1)*2d), zeros elsewhere.
    phase_ref: (1, lane_w)    f32 -- 0 on sin lanes, pi/2 on cos lanes.
    out_ref:   (rows, lane_w) out dtype.

    theta[r, L] = x[r, L // (2d)] * (W[L mod d] * 2pi) + phase[L]
    out[r, L]   = sin(theta[r, L])   # cos comes from the +pi/2 phase, so exactly
                                     # one transcendental per output element.
    """
    x = x_ref[...]                                  # (rows, p)
    p = x.shape[1]
    # Lane-disjoint weight rows -> sum of p broadcast multiplies (cheap VPU work
    # next to the sin polynomial); everything stays lane-dense.
    acc = x[:, 0:1] * w_ref[0:1, :]                 # (rows,1)*(1,lane_w)
    for j in range(1, p):                           # static unroll, p = 128 // (2d)
        acc = acc + x[:, j:j + 1] * w_ref[j:j + 1, :]
    theta = acc + phase_ref[...]
    out_ref[...] = jnp.sin(theta).astype(out_ref.dtype)


def _pick_rows_block(rows_total: int, lane_w: int, out_bytes: int, sub: int,
                     target_out_tile_bytes: int = 1 << 20) -> int:
    """Packed output rows per grid step, using the *lane-padded* VMEM footprint.

    Per step: out block = rows * round_up(lane_w,128) * out_bytes, x block =
    rows * 128 * 4 B (the (rows, p) block lane-pads to 128).  With a ~1 MiB out
    tile that is ~2 MiB per step, ~4 MiB double-buffered -- safe on v5e's 16 MiB
    scoped-VMEM default and far below v6e/v7x's 32 MiB.
    """
    rows_aligned = _round_up(max(rows_total, 1), sub)
    lane_padded = _round_up(lane_w, 128)
    blk = max(sub, (target_out_tile_bytes // (lane_padded * out_bytes)) // sub * sub)
    blk = min(blk, rows_aligned)
    # Give the "parallel" grid axis >= 2 steps when there is enough work so v7x
    # can spread it over both TensorCores.
    if blk >= rows_aligned and rows_aligned >= 2 * sub:
        blk = _round_up(rows_aligned // 2, sub)
    return blk


def init_gaussian_fourier_projection(key, dim: int, scale: float = 30.0):
    """Returns (W, W_prescaled). W matches torch.randn(d)*scale; prescaled folds 2*pi."""
    d = dim // 2
    assert d * 2 == dim and d >= 1, "`dim` must be a positive even integer"
    W = jax.random.normal(key, (d,), dtype=jnp.float32) * scale
    W_prescaled = W * (2.0 * jnp.pi)     # fold 2*pi at init, not per call
    return W, W_prescaled


@functools.partial(jax.jit, static_argnames=("out_dtype",))
def gaussian_fourier_projection(x: jax.Array, W_prescaled: jax.Array,
                                out_dtype=jnp.float32) -> jax.Array:
    """x: (B,) float, W_prescaled: (d,) float (= W * 2*pi) -> (B, 2*d)."""
    B = x.shape[0]
    d = W_prescaled.shape[0]
    two_d = 2 * d
    out_bytes = jnp.dtype(out_dtype).itemsize
    sub = 16 if out_bytes == 2 else 8            # bf16 native tiles are (16,128)

    # Pack p batch rows per 128-lane output row when 2*d divides 128 evenly;
    # otherwise fall back to one row per output row (still correct).
    p = 128 // two_d if (two_d < 128 and 128 % two_d == 0) else 1
    lane_w = p * two_d

    rows_total = -(-B // p)
    rows_blk = _pick_rows_block(rows_total, lane_w, out_bytes, sub)
    rows_pad = _round_up(rows_total, rows_blk)
    b_pad = rows_pad * p

    # x -> (rows_pad, p): packed rows march with the grid; padded rows give
    # sin(phase) values that are sliced off below.
    x_f = x.astype(jnp.float32)
    if b_pad != B:
        x_f = jnp.pad(x_f, (0, b_pad - B))
    x2 = x_f.reshape(rows_pad, p)

    # Lane-disjoint prescaled weights and the sin/cos phase, built once (tiny).
    w2 = jnp.concatenate([W_prescaled, W_prescaled]).astype(jnp.float32)       # (2d,)
    w_rows = jnp.kron(jnp.eye(p, dtype=jnp.float32), w2[None, :])              # (p, lane_w)
    phase = jnp.concatenate([jnp.zeros((d,), jnp.float32),
                             jnp.full((d,), 0.5 * jnp.pi, dtype=jnp.float32)])
    phase_row = jnp.tile(phase, p)[None, :]                                    # (1, lane_w)

    out_packed = pl.pallas_call(
        _gfp_kernel,
        out_shape=jax.ShapeDtypeStruct((rows_pad, lane_w), out_dtype),
        grid=(rows_pad // rows_blk,),
        in_specs=[
            pl.BlockSpec((rows_blk, p), lambda i: (i, 0)),     # x tile marches with grid
            pl.BlockSpec((p, lane_w), lambda i: (0, 0)),       # weights resident
            pl.BlockSpec((1, lane_w), lambda i: (0, 0)),       # phase resident
        ],
        out_specs=pl.BlockSpec((rows_blk, lane_w), lambda i: (i, 0)),
        compiler_params=pltpu.CompilerParams(
            dimension_semantics=("parallel",),                 # megacore sharding on v7x
        ),
    )(x2, w_rows, phase_row)

    # Free row-major reinterpretation back to (B, 2*d).
    out = out_packed.reshape(rows_pad * p, two_d)
    if b_pad != B:
        out = out[:B]
    return out


def reference(x, W):
    theta = x[:, None] * W[None, :] * (2.0 * jnp.pi)
    return jnp.concatenate([jnp.sin(theta), jnp.cos(theta)], axis=-1)


if __name__ == "__main__":
    key = jax.random.PRNGKey(0)
    k_w, k_x = jax.random.split(key)

    dim = 32                     # embedding dim (must be even) -> d = 16, p = 4
    scale = 30.0
    batch = 6                    # not a multiple of p: exercises padding + slice-off

    W, W_prescaled = init_gaussian_fourier_projection(k_w, dim, scale)
    x = jax.random.uniform(k_x, (batch,), dtype=jnp.float32)

    out = gaussian_fourier_projection(x, W_prescaled)
    out = jax.block_until_ready(out)

    ref = reference(x, W)
    assert out.shape == (batch, dim), out.shape
    # scale=30 * 2*pi puts |theta| in the hundreds of radians, where a single f32
    # ulp on the angle is ~3e-5; folding 2*pi / the +pi/2 phase / sin-impl
    # differences are each a few ulps of the angle, so compare with a tolerance
    # that reflects that (a genuinely wrong kernel produces O(1) errors).
    assert jnp.allclose(out, ref, atol=5e-4, rtol=1e-4), \
        float(jnp.max(jnp.abs(out - ref)))

    print("KERNEL_OK")
</pallas_src>

<mosaic_0001>
module attributes {stable_mosaic.version = 11 : i64} {
  func.func @_gfp_kernel(%arg0: i32, %arg1: memref<8x4xf32, #tpu.memory_space<vmem>>, %arg2: memref<4x128xf32, #tpu.memory_space<vmem>>, %arg3: memref<1x128xf32, #tpu.memory_space<vmem>>, %arg4: memref<8x128xf32, #tpu.memory_space<vmem>>) attributes {dimension_semantics = [#tpu.dimension_semantics<parallel>], iteration_bounds = array<i64: 1>, scalar_prefetch = 0 : i64, scratch_operands = 0 : i64, tpu.core_type = #tpu.core_type<tc>, window_params = [{transform_indices = @transform_0, window_bounds = array<i64: 8, 4>}, {pipeline_mode = #tpu.pipeline_mode<synchronous>, transform_indices = @transform_1, window_bounds = array<i64: 4, 128>}, {pipeline_mode = #tpu.pipeline_mode<synchronous>, transform_indices = @transform_2, window_bounds = array<i64: 1, 128>}, {transform_indices = @transform_3, window_bounds = array<i64: 8, 128>}]} {
    %c0 = arith.constant 0 : index
    %c0_0 = arith.constant 0 : index
    %0 = vector.load %arg1[%c0, %c0_0] : memref<8x4xf32, #tpu.memory_space<vmem>>, vector<8x4xf32>
    %1 = vector.extract_strided_slice %0 {offsets = [0, 0], sizes = [8, 1], strides = [1, 1]} : vector<8x4xf32> to vector<8x1xf32>
    %c0_1 = arith.constant 0 : index
    %c0_2 = arith.constant 0 : index
    %2 = vector.load %arg2[%c0_1, %c0_2] : memref<4x128xf32, #tpu.memory_space<vmem>>, vector<1x128xf32>
    %3 = vector.broadcast %1 : vector<8x1xf32> to vector<8x128xf32>
    %4 = vector.broadcast %2 : vector<1x128xf32> to vector<8x128xf32>
    %5 = arith.mulf %3, %4 : vector<8x128xf32>
    %6 = vector.extract_strided_slice %0 {offsets = [0, 1], sizes = [8, 1], strides = [1, 1]} : vector<8x4xf32> to vector<8x1xf32>
    %c1 = arith.constant 1 : index
    %c0_3 = arith.constant 0 : index
    %7 = vector.load %arg2[%c1, %c0_3] : memref<4x128xf32, #tpu.memory_space<vmem>>, vector<1x128xf32>
    %8 = vector.broadcast %6 : vector<8x1xf32> to vector<8x128xf32>
    %9 = vector.broadcast %7 : vector<1x128xf32> to vector<8x128xf32>
    %10 = arith.mulf %8, %9 : vector<8x128xf32>
    %11 = arith.addf %5, %10 : vector<8x128xf32>
    %12 = vector.extract_strided_slice %0 {offsets = [0, 2], sizes = [8, 1], strides = [1, 1]} : vector<8x4xf32> to vector<8x1xf32>
    %c2 = arith.constant 2 : index
    %c0_4 = arith.constant 0 : index
    %13 = vector.load %arg2[%c2, %c0_4] : memref<4x128xf32, #tpu.memory_space<vmem>>, vector<1x128xf32>
    %14 = vector.broadcast %12 : vector<8x1xf32> to vector<8x128xf32>
    %15 = vector.broadcast %13 : vector<1x128xf32> to vector<8x128xf32>
    %16 = arith.mulf %14, %15 : vector<8x128xf32>
    %17 = arith.addf %11, %16 : vector<8x128xf32>
    %18 = vector.extract_strided_slice %0 {offsets = [0, 3], sizes = [8, 1], strides = [1, 1]} : vector<8x4xf32> to vector<8x1xf32>
    %c3 = arith.constant 3 : index
    %c0_5 = arith.constant 0 : index
    %19 = vector.load %arg2[%c3, %c0_5] : memref<4x128xf32, #tpu.memory_space<vmem>>, vector<1x128xf32>
    %20 = vector.broadcast %18 : vector<8x1xf32> to vector<8x128xf32>
    %21 = vector.broadcast %19 : vector<1x128xf32> to vector<8x128xf32>
    %22 = arith.mulf %20, %21 : vector<8x128xf32>
    %23 = arith.addf %17, %22 : vector<8x128xf32>
    %c0_6 = arith.constant 0 : index
    %c0_7 = arith.constant 0 : index
    %24 = vector.load %arg3[%c0_6, %c0_7] : memref<1x128xf32, #tpu.memory_space<vmem>>, vector<1x128xf32>
    %25 = vector.broadcast %24 : vector<1x128xf32> to vector<8x128xf32>
    %26 = arith.addf %23, %25 : vector<8x128xf32>
    %27 = math.sin %26 : vector<8x128xf32>
    %c0_8 = arith.constant 0 : index
    %c0_9 = arith.constant 0 : index
    %28 = vector.load %arg4[%c0_8, %c0_9] : memref<8x128xf32, #tpu.memory_space<vmem>>, vector<8x128xf32>
    tpu.vector_store %arg4[%c0_8, %c0_9], %27 {strides = array<i32>} : memref<8x128xf32, #tpu.memory_space<vmem>>, vector<8x128xf32>,
    return
  }
  func.func @transform_0(%arg0: i32) -> (i32, i32) {
    %c0_i32 = arith.constant 0 : i32
    %c0_i32_0 = arith.constant 0 : i32
    return %arg0, %c0_i32 : i32, i32
  }
  func.func @transform_1(%arg0: i32) -> (i32, i32) {
    %c0_i32 = arith.constant 0 : i32
    %c0_i32_0 = arith.constant 0 : i32
    %c0_i32_1 = arith.constant 0 : i32
    return %c0_i32, %c0_i32_0 : i32, i32
  }
  func.func @transform_2(%arg0: i32) -> (i32, i32) {
    %c0_i32 = arith.constant 0 : i32
    %c0_i32_0 = arith.constant 0 : i32
    %c0_i32_1 = arith.constant 0 : i32
    return %c0_i32, %c0_i32_0 : i32, i32
  }
  func.func @transform_3(%arg0: i32) -> (i32, i32) {
    %c0_i32 = arith.constant 0 : i32
    %c0_i32_0 = arith.constant 0 : i32
    return %arg0, %c0_i32 : i32, i32
  }
}

</mosaic_0001>

<bundles_post_ra>
// kernel: tile.7
= control target key start
LH: loop header
LB: loop body
LE: loop exit
PB: predicated region body
PF: predicated region fallthrough
CT: control target
= control target key end

     0   :  { %s37_s8 = smov 32   ;;  %s38_s9 = smov 64   ;;  %vm7_vm0 = vcmask 261120   ;;  %vm13_vm1 = vcmask 1048320   ;;  %vm19_vm2 = vcmask 785920   ;;  %vm25_vm3 = vcmask 523520   ;;  %s55_s0 = inlined_call_operand.vmem [shape: f32[4,32], index: 0, kind: input, shape index: {}]   ;;  %s56_s1 = inlined_call_operand.vmem [shape: f32[1,128], index: 1, kind: output, shape index: {}]  }
   0x1   :  { %v4_v0 = vld [vmem:[%s55_s0] sm:$0xf]  ;;  %s36_s0 = smov 96  }
   0x2   :  { %5 = vst [vmem:[#allocation1] sm:$0xf] %v4_v0 }
   0x9   :  { %v10_v1 = vld [vmem:[#allocation1 + $0x3] sm:$0x1]   ;;  %v22_v2 = vld [vmem:[#allocation1 + $0x1] sm:$0x1]   ;;  %v16_v3 = vld [vmem:[#allocation1 + $0x2] sm:$0x1]  }
   0xa   :  { %11 = vrot.lane.b32.xlu0 %v10_v1, %s36_s0  ;;  %23 = vrot.lane.b32.xlu1 %v22_v2, %s37_s8  ;;  %v6_v4 = vld [vmem:[#allocation1] sm:$0x1]  }
   0xb   :  { %8 = vst.msk [vmem:[#allocation0] sm:$0x1] %vm7_vm0, %v6_v4  }
  0x12   :  { %17 = vrot.lane.b32.xlu0 %v16_v3, %s38_s9 }
  0x7c   :  { %v12_v5 = vpop.permute.xlu0 %11   ;;  %v24_v6 = vpop.permute.xlu1 %23  }
  0x7d   :  { %14 = vst.msk [vmem:[#allocation0] sm:$0x1] %vm13_vm1, %v12_v5  }
  0x84   :  { %v18_v7 = vpop.permute.xlu0 %17  }
  0x85   :  { %20 = vst.msk [vmem:[#allocation0] sm:$0x1] %vm19_vm2, %v18_v7  }
  0x86   :  { %26 = vst.msk [vmem:[#allocation0] sm:$0x1] %vm25_vm3, %v24_v6  }
  0x8d   :  { %v29_v8 = vld [vmem:[#allocation0] sm:$0x1] }
  0x8e   :  { %32 = vst [vmem:[%s56_s1] sm:$0x1] %v29_v8 }

// kernel: gaussian_fourier_projection.1
= control target key start
LH: loop header
LB: loop body
LE: loop exit
PB: predicated region body
PF: predicated region fallthrough
CT: control target
= control target key end

     0   :  { %v235_v0 = vmov 0   ;;  %v236_v2 = vmov 2   ;;  %v237_v3 = vmov 1   ;;  %v238_v4 = vmov 3   ;;  %s347_s0 = inlined_call_operand.vmem [shape: f32[8,4], index: 0, kind: input, shape index: {}]   ;;  %s348_s1 = inlined_call_operand.vmem [shape: f32[4,128], index: 1, kind: input, shape index: {}]   ;;  %s349_s2 = inlined_call_operand.vmem [shape: f32[1,128], index: 2, kind: input, shape index: {}]   ;;  %s350_s3 = inlined_call_operand.vmem [shape: f32[8,128], index: 3, kind: output, shape index: {}]  }
   0x1   :  { %225 = vset.pattern.permute.xlu0 %v235_v0  ;;  %v14_v1 = vld [vmem:[%s347_s0] sm:$0xff]  ;;  %227 = vset.pattern.permute.xlu1 %v236_v2  ;;  %v239_v33 = vmov 683565275   ;;  %v240_v35 = vmov 2475754826  }
   0x2   :  { %18 = vperm.xlu0 %225, %v14_v1   ;;  %33 = vperm.xlu1 %227, %v14_v1   ;;  %v230_v7 = vld [vmem:[%s348_s1] ss:$0 sm:$0xff]  ;;  %v232_v8 = vld [vmem:[%s348_s1 + $0x1] ss:$0 sm:$0xff]  ;;  %v231_v9 = vld [vmem:[%s348_s1 + $0x2] ss:$0 sm:$0xff] }
   0x3   :  { %v233_v10 = vld [vmem:[%s348_s1 + $0x3] ss:$0 sm:$0xff]  ;;  %v234_v18 = vld [vmem:[%s349_s2] ss:$0 sm:$0xff]  ;;  %v241_v38 = vmov 2131351028  }
   0x4   :  { %v242_v41 = vmov 2102212464   ;;  %v243_v44 = vmov 920167782   ;;  %v244_v47 = vmov 1326507024  }
   0xa   :  { %226 = vset.pattern.permute.xlu0 %v237_v3  ;;  %228 = vset.pattern.permute.xlu1 %v238_v4 }
   0xb   :  { %25 = vperm.xlu0 %226, %v14_v1   ;;  %41 = vperm.xlu1 %228, %v14_v1  }
  0x13   :  { %229 = vset.pattern.permute.xlu0 %v238_v4 }
  0x74   :  { %v19_v5 = vpop.permute.xlu0 %18  ;;  %v34_v6 = vpop.permute.xlu1 %33 }
  0x75   :  { %v22_v13 = vmul.f32 %v230_v7, %v19_v5  ;;  %v37_v15 = vmul.f32 %v231_v9, %v34_v6 }
  0x7d   :  { %v26_v11 = vpop.permute.xlu0 %25  ;;  %v42_v12 = vpop.permute.xlu1 %41 }
  0x7e   :  { %v29_v14 = vmul.f32 %v232_v8, %v26_v11  ;;  %v45_v17 = vmul.f32 %v233_v10, %v42_v12 }
  0x80   :  { %v30_v16 = vadd.f32 %v29_v14, %v22_v13 }
  0x82   :  { %v38_v19 = vadd.f32 %v37_v15, %v30_v16 }
  0x84   :  { %v46_v20 = vadd.f32 %v45_v17, %v38_v19 }
  0x86   :  { %v284_v21 = vadd.f32 %v234_v18, %v46_v20 }
  0x88   :  { %v55_v22 = vand.u32 2139095040, %v284_v21  ;;  %v52_v25 = vand.u32 2147483647, %v284_v21  ;;  %vm54_vm12 = vcmp.lt.s32.totalorder %v284_v21, 0 }
  0x8a   :  { %v56_v23 = vshrl.u32 %v55_v22, 23  ;;  %v59_v27 = vand.u32 8388607, %v52_v25  ;;  %vm53_vm13 = vcmp.le.f32.partialorder %v52_v25, 0.7853982 }
  0x8c   :  { %v212_v24 = vadd.s32 4294967169, %v56_v23  ;;  %v60_v31 = vor.u32 8388608, %v59_v27 }
  0x8e   :  { %v62_v26 = vadd.s32 1, %v212_v24  ;;  %v301_v54 = vshll.u32 %v60_v31, 8 }
  0x90   :  { %vm63_vm0 = vcmp.gt.s32.totalorder %v62_v26, 0  ;;  %v101_v63 = vand.u32 65535, %v301_v54  ;;  %v102_v1 = vshrl.u32 %v301_v54, 16 }
  0x91   :  { %v64_v28 = vsel %vm63_vm0, %v62_v26, 0 }
  0x92   :  { %v66_v29 = vand.u32 31, %v64_v28  ;;  %v292_v32 = vshrl.u32 %v64_v28, 5 }
  0x94   :  { %v290_v30 = vsub.s32 32, %v66_v29  ;;  %v69_v34 = vshll.u32 %v239_v33, %v66_v29  ;;  %v72_v36 = vshll.u32 %v240_v35, %v66_v29  ;;  %v75_v40 = vshll.u32 %v241_v38, %v66_v29 }
  0x95   :  { %v78_v43 = vshll.u32 %v242_v41, %v66_v29  ;;  %v81_v46 = vshll.u32 %v243_v44, %v66_v29  ;;  %vm84_vm1 = vcmp.lt.s32.totalorder %v292_v32, 1  ;;  %vm87_vm2 = vcmp.lt.s32.totalorder %v292_v32, 4 }
  0x96   :  { %v70_v37 = vshrl.u32 %v240_v35, %v290_v30  ;;  %v73_v39 = vshrl.u32 %v241_v38, %v290_v30  ;;  %v76_v42 = vshrl.u32 %v242_v41, %v290_v30  ;;  %v79_v45 = vshrl.u32 %v243_v44, %v290_v30 }
  0x97   :  { %v82_v48 = vshrl.u32 %v244_v47, %v290_v30  ;;  %vm86_vm3 = vcmp.lt.s32.totalorder %v292_v32, 3  ;;  %vm85_vm4 = vcmp.lt.s32.totalorder %v292_v32, 2  ;;  %v68_v28 = vshrl.u32 %v239_v33, %v290_v30 }
  0x98   :  { %v71_v49 = vor.u32 %v70_v37, %v69_v34  ;;  %v74_v50 = vor.u32 %v73_v39, %v72_v36  ;;  %v77_v51 = vor.u32 %v76_v42, %v75_v40  ;;  %v80_v52 = vor.u32 %v79_v45, %v78_v43 }
  0x99   :  { %v83_v53 = vor.u32 %v82_v48, %v81_v46 }
  0x9a   :  { %v92_v55 = vsel %vm84_vm1, %v71_v49, %v74_v50  ;;  %v96_v56 = vsel %vm84_vm1, %v74_v50, %v77_v51  ;;  %v93_v57 = vsel %vm87_vm2, %v80_v52, 920167782  ;;  %v89_v24 = vsel %vm87_vm2, %v77_v51, 2102212464 }
  0x9b   :  { %v97_v58 = vsel %vm87_vm2, %v83_v53, 1326507024  ;;  %v94_v59 = vsel %vm86_vm3, %v77_v51, %v93_v57  ;;  %v88_v37 = vsel %vm84_vm1, %v68_v28, %v71_v49  ;;  %v90_v38 = vsel %vm86_vm3, %v74_v50, %v89_v24 }
  0x9c   :  { %v98_v60 = vsel %vm86_vm3, %v80_v52, %v97_v58  ;;  %v95_v61 = vsel %vm85_vm4, %v92_v55, %v94_v59  ;;  %v91_v30 = vsel %vm85_vm4, %v88_v37, %v90_v38  ;;  %vm195_vm1 = vweird.f32 %v284_v21 }
  0x9d   :  { %v99_v62 = vsel %vm85_vm4, %v96_v56, %v98_v60  ;;  %v125_v4 = vand.u32 65535, %v95_v61  ;;  %v126_v5 = vshrl.u32 %v95_v61, 16  ;;  %v145_v45 = vmul.u32 %v301_v54, %v91_v30 }
  0x9e   :  { %v103_v2 = vand.u32 65535, %v99_v62  ;;  %v104_v3 = vshrl.u32 %v99_v62, 16 }
  0x9f   :  { %v128_v8 = vmul.u32 %v126_v5, %v101_v63  ;;  %v129_v9 = vmul.u32 %v125_v4, %v102_v1  ;;  %v127_v13 = vmul.u32 %v125_v4, %v101_v63  ;;  %v130_v17 = vmul.u32 %v126_v5, %v102_v1 }
  0xa0   :  { %v106_v6 = vmul.u32 %v104_v3, %v101_v63  ;;  %v107_v7 = vmul.u32 %v103_v2, %v102_v1  ;;  %v105_v10 = vmul.u32 %v103_v2, %v101_v63  ;;  %v108_v12 = vmul.u32 %v104_v3, %v102_v1 }
  0xa1   :  { %v131_v14 = vshll.u32 %v128_v8, 16  ;;  %v133_v19 = vshll.u32 %v129_v9, 16  ;;  %v132_v35 = vshrl.u32 %v128_v8, 16  ;;  %v134_v41 = vshrl.u32 %v129_v9, 16 }
  0xa2   :  { %v109_v11 = vshll.u32 %v106_v6, 16  ;;  %v111_v15 = vshll.u32 %v107_v7, 16  ;;  %v110_v29 = vshrl.u32 %v106_v6, 16  ;;  %v112_v39 = vshrl.u32 %v107_v7, 16 }
  0xa3   :  { %vm135_vm6 = vc.u32 %v127_v13, %v131_v14  ;;  %v137_v20 = vadd.s32 %v131_v14, %v127_v13 }
  0xa4   :  { %vm113_vm5 = vc.u32 %v105_v10, %v109_v11  ;;  %v115_v16 = vadd.s32 %v109_v11, %v105_v10  ;;  %v136_v23 = vsel %vm135_vm6, 1, %v235_v0 }
  0xa5   :  { %v114_v18 = vsel %vm113_vm5, 1, %v235_v0  ;;  %v138_v27 = vadd.s32 %v136_v23, %v130_v17  ;;  %vm139_vm8 = vc.u32 %v137_v20, %v133_v19  ;;  %v141_v44 = vadd.s32 %v137_v20, %v133_v19 }
  0xa6   :  { %v116_v22 = vadd.s32 %v114_v18, %v108_v12  ;;  %vm117_vm7 = vc.u32 %v115_v16, %v111_v15  ;;  %v140_v34 = vsel %vm139_vm8, 1, %v235_v0 }
  0xa7   :  { %v118_v26 = vsel %vm117_vm7, 1, %v235_v0  ;;  %v142_v36 = vadd.s32 %v140_v34, %v138_v27 }
  0xa8   :  { %v120_v31 = vadd.s32 %v118_v26, %v116_v22 }
  0xa9   :  { %v143_v42 = vadd.s32 %v142_v36, %v132_v35 }
  0xaa   :  { %v121_v40 = vadd.s32 %v120_v31, %v110_v29 }
  0xab   :  { %v144_v33 = vadd.s32 %v143_v42, %v134_v41 }
  0xac   :  { %v122_v43 = vadd.s32 %v121_v40, %v112_v39 }
  0xad   :  { %v148_v0 = vadd.s32 1, %v144_v33 }
  0xae   :  { %vm147_vm9 = vc.u32 %v122_v43, %v141_v44  ;;  %v146_v32 = vadd.s32 %v141_v44, %v122_v43 }
  0xaf   :  { %v149_v46 = vsel %vm147_vm9, %v148_v0, %v144_v33 }
  0xb0   :  { %v150_v47 = vadd.s32 %v149_v46, %v145_v45 }
  0xb2   :  { %v151_v48 = vadd.s32 536870912, %v150_v47 }
  0xb4   :  { %v152_v49 = vshrl.u32 %v151_v48, 30 }
  0xb6   :  { %v153_v51 = vshll.u32 %v152_v49, 30  ;;  %v176_v7 = vsub.s32 4, %v152_v49 }
  0xb8   :  { %v154_v50 = vsub.s32 %v150_v47, %v153_v51  ;;  %v177_v12 = vsel %vm54_vm12, %v176_v7, %v152_v49 }
  0xb9   :  { %v179_v15 = vsel %vm53_vm13, 0, %v177_v12 }
  0xba   :  { %vm155_vm10 = vcmp.lt.s32.totalorder %v154_v50, 0  ;;  %v156_v52 = vsub.s32 0, %v154_v50  ;;  %v196_v20 = vadd.s32 3, %v179_v15 }
  0xbc   :  { %v157_v53 = vsel %vm155_vm10, %v156_v52, %v154_v50  ;;  %v197_v26 = vand.u32 3, %v196_v20 }
  0xbd   :  { %v158_v55 = vclz %v157_v53 }
  0xbe   :  { %vm199_vm14 = vcmp.eq.s32.totalorder %v197_v26, 0  ;;  %vm202_vm15 = vcmp.eq.s32.totalorder %v197_v26, 2  ;;  %vm198_vm0 = vcmp.lt.s32.totalorder %v197_v26, 2 }
  0xbf   :  { %v213_v56 = vadd.s32 4294967294, %v158_v55 }
  0xc1   :  { %vm214_vm11 = vcmp.lt.s32.totalorder %v213_v56, 0 }
  0xc2   :  { %v161_v57 = vsel %vm214_vm11, 0, %v213_v56 }
  0xc3   :  { %v162_v58 = vsub.s32 32, %v161_v57  ;;  %v166_v59 = vsub.s32 4294967266, %v161_v57  ;;  %v163_v60 = vshll.u32 %v154_v50, %v161_v57 }
  0xc5   :  { %v164_v61 = vshrl.u32 %v146_v32, %v162_v58  ;;  %v167_v62 = vadd.s32 127, %v166_v59 }
  0xc7   :  { %v165_v54 = vor.u32 %v164_v61, %v163_v60  ;;  %v168_v63 = vshll.u32 %v167_v62, 23 }
  0xc9   :  { %v169_v1 = vor.u32 4788187, %v168_v63  ;;  %v172_v3 = vcvt.s32.f32 %v165_v54 }
  0xcb   :  { %v170_v2 = vand.u32 2147483647, %v169_v1 }
  0xcd   :  { %v173_v4 = vmul.f32 %v172_v3, %v170_v2 }
  0xcf   :  { %v174_v5 = vxor.u32 2147483648, %v173_v4 }
  0xd1   :  { %v175_v6 = vsel %vm54_vm12, %v174_v5, %v173_v4 }
  0xd2   :  { %v178_v8 = vsel %vm53_vm13, %v284_v21, %v175_v6 }
  0xd3   :  { %v180_v9 = vmul.f32 %v178_v8, %v178_v8 }
  0xd5   :  { %v181_v10 = vmul.f32 -0.001358992, %v180_v9  ;;  %v188_v11 = vmul.f32 -0.00019511016, %v180_v9 }
  0xd7   :  { %v182_v13 = vadd.f32 0.041655596, %v181_v10  ;;  %v189_v14 = vadd.f32 0.008332121, %v188_v11 }
  0xd9   :  { %v183_v16 = vmul.f32 %v182_v13, %v180_v9  ;;  %v190_v17 = vmul.f32 %v189_v14, %v180_v9 }
  0xdb   :  { %v184_v18 = vadd.f32 -0.4999988, %v183_v16  ;;  %v191_v19 = vadd.f32 -0.16666654, %v190_v17 }
  0xdd   :  { %v185_v22 = vmul.f32 %v184_v18, %v180_v9  ;;  %v192_v23 = vmul.f32 %v191_v19, %v180_v9 }
  0xdf   :  { %v186_v24 = vadd.f32 1.0, %v185_v22  ;;  %v193_v25 = vadd.f32 1.0, %v192_v23 }
  0xe1   :  { %v194_v27 = vmul.f32 %v193_v25, %v178_v8  ;;  %v203_v28 = vxor.u32 2147483648, %v186_v24 }
  0xe3   :  { %v200_v29 = vxor.u32 2147483648, %v194_v27  ;;  %v204_v34 = vsel %vm202_vm15, %v203_v28, %v194_v27 }
  0xe5   :  { %v201_v31 = vsel %vm199_vm14, %v186_v24, %v200_v29 }
  0xe6   :  { %v205_v35 = vsel %vm198_vm0, %v201_v31, %v204_v34 }
  0xe7   :  { %v206_v36 = vsel %vm195_vm1, nan, %v205_v35 }
  0xe8   :  { %207 = vst [vmem:[%s350_s3] sm:$0xff] %v206_v36 }

</bundles_post_ra>
